<compile_context>
chip_gen: v7x
topology: tpu7x:2x2x1
jax: 0.10.0
libtpu: 0.0.40
codegen_flags: <defaults>
</compile_context>

<pallas_src>
import math

import jax
import jax.numpy as jnp
from jax.experimental import pallas as pl
from jax.experimental.pallas import tpu as pltpu

_GELU_C = math.sqrt(2.0 / math.pi)


def _ff_kernel(x_ref, w1_ref, b1_ref, w2_ref, b2_ref, out_ref, acc_ref):
    h_idx = pl.program_id(1)

    @pl.when(h_idx == 0)
    def _init():
        acc_ref[...] = jnp.zeros_like(acc_ref)

    # First linear on the current hidden slice: (TM, D)bf16 @ (D, TH)bf16 -> f32, + b1 slice.
    h = jnp.dot(x_ref[...], w1_ref[...], preferred_element_type=jnp.float32)
    h = h + b1_ref[...]

    # tanh-approx GELU (exact PyTorch formula), computed in f32 (VPU poly + EUP tanh).
    g = 0.5 * h * (1.0 + jnp.tanh(_GELU_C * (h + 0.044715 * (h * h * h))))

    # Dropout(p=0.0) is the identity — no-op.

    # Second linear as reduction over hidden tiles: (TM, TH)bf16 @ (TH, D)bf16 -> f32 accumulate.
    # (Deliberate precision trade: GELU output is dropped to the weight dtype before the MXU.)
    acc_ref[...] += jnp.dot(g.astype(w2_ref.dtype), w2_ref[...],
                            preferred_element_type=jnp.float32)

    @pl.when(h_idx == pl.num_programs(1) - 1)
    def _finalize():
        out_ref[...] = (acc_ref[...] + b2_ref[...]).astype(out_ref.dtype)


def _round_up(x, m):
    return ((x + m - 1) // m) * m


def _hidden_tile_candidates(hidden):
    """Hidden-tile candidates, largest first: full extent, then 128-aligned divisors."""
    cands = [hidden]
    start = (hidden // 128) * 128
    for t in range(start, 127, -128):
        if t != hidden and hidden % t == 0:
            cands.append(t)
    return cands


def feed_forward(x, w1, b1, w2, b2, *, compute_dtype=jnp.bfloat16, tm_pref=512):
    """x: (..., dim). Weights stored as (in_features, out_features). Returns (net(x), x)."""
    dim = x.shape[-1]
    hidden = w1.shape[1]
    lead = x.shape[:-1]
    out_dtype = x.dtype
    x2d = x.reshape(-1, dim)
    M = x2d.shape[0]

    c_isz = jnp.dtype(compute_dtype).itemsize
    o_isz = jnp.dtype(out_dtype).itemsize

    # Generation-aware VMEM budget (v5e/v6e 128 MiB, v7x 64 MiB), 15% headroom.
    try:
        vmem_cap = int(pltpu.get_tpu_info().vmem_capacity_bytes)
    except Exception:  # pragma: no cover - conservative fallback
        vmem_cap = 64 * 2**20
    vmem_budget = int(vmem_cap * 0.85)

    def vmem_est(tm, th):
        # Double-buffered BlockSpec inputs + outputs, f32 accumulator scratch,
        # f32 GELU intermediates (h and g), and Mosaic internal scratch headroom.
        inputs = 2 * ((tm * dim) * c_isz        # x row tile
                      + (dim * th) * c_isz      # w1 slice
                      + th * 4                  # b1 slice (f32)
                      + (th * dim) * c_isz      # w2 slice
                      + dim * 4)                # b2 (f32)
        outputs = 2 * tm * dim * o_isz
        acc = tm * dim * 4
        gelu_tmp = 2 * tm * th * 4
        internal = 4 * 2**20
        return inputs + outputs + acc + gelu_tmp + internal

    # --- Row tile: 16-row aligned (bf16 sublane packing), preferred 512 (128-multiple). ---
    row_align = 16 if c_isz < 4 else 8
    TM = _round_up(M, row_align) if M <= tm_pref else tm_pref

    # --- Hidden tile: largest candidate that fits; prefer TH = hidden (resident weights). ---
    th_cands = _hidden_tile_candidates(hidden)
    TH = None
    for cand in th_cands:
        if vmem_est(TM, cand) <= vmem_budget:
            TH = cand
            break
    if TH is None:
        TH = th_cands[-1]
        while TM > row_align and vmem_est(TM, TH) > vmem_budget:
            TM = max(row_align, ((TM // 2) // row_align) * row_align)

    # --- Pad rows to a tile multiple (no whole-matrix fallback). ---
    M_pad = _round_up(M, TM)
    # Prefer >=2 row tiles so the "parallel" axis shards across both v7x TensorCores.
    if M_pad // TM == 1 and M_pad >= 2 * 128 and (M_pad // 2) % row_align == 0:
        TM = M_pad // 2
    grid = (M_pad // TM, hidden // TH)

    est = vmem_est(TM, TH)
    vmem_limit = int(min(vmem_budget, max(32 * 2**20, 2 * est)))

    # Cast MXU operands to bf16 (halves HBM weight traffic, bf16-native MXU); biases stay f32.
    xc = x2d.astype(compute_dtype)
    if M_pad != M:
        xc = jnp.pad(xc, ((0, M_pad - M), (0, 0)))
    w1c = w1.astype(compute_dtype)
    w2c = w2.astype(compute_dtype)
    b1_2d = b1.reshape(1, hidden).astype(jnp.float32)
    b2_2d = b2.reshape(1, dim).astype(jnp.float32)

    out = pl.pallas_call(
        _ff_kernel,
        out_shape=jax.ShapeDtypeStruct((M_pad, dim), out_dtype),
        grid_spec=pltpu.PrefetchScalarGridSpec(
            num_scalar_prefetch=0,
            grid=grid,                                                 # (rows, hidden) — reduction last
            in_specs=[
                pl.BlockSpec((TM, dim), lambda m, h: (m, 0)),          # x row tile (resident across h)
                pl.BlockSpec((dim, TH), lambda m, h: (0, h)),          # w1 slice (resident if TH==hidden)
                pl.BlockSpec((1, TH), lambda m, h: (0, h)),            # b1 slice
                pl.BlockSpec((TH, dim), lambda m, h: (h, 0)),          # w2 slice (resident if TH==hidden)
                pl.BlockSpec((1, dim), lambda m, h: (0, 0)),           # b2 (resident)
            ],
            out_specs=pl.BlockSpec((TM, dim), lambda m, h: (m, 0)),    # resident across hidden axis
            scratch_shapes=[pltpu.VMEM((TM, dim), jnp.float32)],
        ),
        compiler_params=pltpu.CompilerParams(
            dimension_semantics=("parallel", "arbitrary"),
            vmem_limit_bytes=vmem_limit,
        ),
    )(xc, w1c, b1_2d, w2c, b2_2d)

    out = out[:M].reshape(*lead, dim)
    return out, x


def init_params(key, dim, hidden_dim, dtype=jnp.float32):
    # Deterministic init mimicking nn.Linear (uniform in +/- 1/sqrt(fan_in)).
    k1, k2, k3, k4 = jax.random.split(key, 4)
    lim1 = 1.0 / math.sqrt(dim)
    lim2 = 1.0 / math.sqrt(hidden_dim)
    w1 = jax.random.uniform(k1, (dim, hidden_dim), dtype, -lim1, lim1)
    b1 = jax.random.uniform(k2, (hidden_dim,), dtype, -lim1, lim1)
    w2 = jax.random.uniform(k3, (hidden_dim, dim), dtype, -lim2, lim2)
    b2 = jax.random.uniform(k4, (dim,), dtype, -lim2, lim2)
    return w1, b1, w2, b2


if __name__ == "__main__":
    key = jax.random.PRNGKey(0)
    kx, kp = jax.random.split(key)

    # Small but lane-aligned shapes: dim/hidden multiples of 128; hidden=1024 exercises the
    # resident-weight (TH = hidden) path with a single reduction step.
    batch, seq, dim, hidden = 2, 8, 128, 1024
    x = jax.random.normal(kx, (batch, seq, dim), dtype=jnp.float32)
    w1, b1, w2, b2 = init_params(kp, dim, hidden)

    y, x_out = feed_forward(x, w1, b1, w2, b2)
    jax.block_until_ready((y, x_out))

    # Pure-JAX f32 reference (kernel uses bf16 MXU operands with f32 accumulation,
    # hence the loose tolerance).
    c = math.sqrt(2.0 / math.pi)
    h = x.reshape(-1, dim) @ w1 + b1
    g = 0.5 * h * (1.0 + jnp.tanh(c * (h + 0.044715 * h ** 3)))
    ref = (g @ w2 + b2).reshape(batch, seq, dim)
    assert jnp.allclose(y, ref, atol=2e-2, rtol=2e-2), "mismatch vs reference"
    assert jnp.array_equal(x_out, x), "second output must be input passthrough"

    print("KERNEL_OK")
</pallas_src>

<mosaic_0001>
module attributes {stable_mosaic.version = 11 : i64} {
  func.func @_ff_kernel(%arg0: i32, %arg1: i32, %arg2: memref<16x128xbf16, #tpu.memory_space<vmem>>, %arg3: memref<128x1024xbf16, #tpu.memory_space<vmem>>, %arg4: memref<1x1024xf32, #tpu.memory_space<vmem>>, %arg5: memref<1024x128xbf16, #tpu.memory_space<vmem>>, %arg6: memref<1x128xf32, #tpu.memory_space<vmem>>, %arg7: memref<16x128xf32, #tpu.memory_space<vmem>>, %arg8: memref<16x128xf32, #tpu.memory_space<vmem>>) attributes {dimension_semantics = [#tpu.dimension_semantics<parallel>, #tpu.dimension_semantics<arbitrary>], iteration_bounds = array<i64: 1, 1>, scalar_prefetch = 0 : i64, scratch_operands = 1 : i64, tpu.core_type = #tpu.core_type<tc>, window_params = [{transform_indices = @transform_0, window_bounds = array<i64: 16, 128>}, {transform_indices = @transform_1, window_bounds = array<i64: 128, 1024>}, {transform_indices = @transform_2, window_bounds = array<i64: 1, 1024>}, {transform_indices = @transform_3, window_bounds = array<i64: 1024, 128>}, {pipeline_mode = #tpu.pipeline_mode<synchronous>, transform_indices = @transform_4, window_bounds = array<i64: 1, 128>}, {transform_indices = @transform_5, window_bounds = array<i64: 16, 128>}]} {
    %c0_i32 = arith.constant 0 : i32
    %0 = arith.cmpi eq, %arg1, %c0_i32 : i32
    %1 = arith.extui %0 : i1 to i32
    %c0_i32_0 = arith.constant 0 : i32
    %2 = arith.cmpi ne, %1, %c0_i32_0 : i32
    scf.if %2 {
      %cst_19 = arith.constant 0.000000e+00 : f32
      %31 = vector.broadcast %cst_19 : f32 to vector<16x128xf32>
      %c0_20 = arith.constant 0 : index
      %c0_21 = arith.constant 0 : index
      %32 = vector.load %arg8[%c0_20, %c0_21] : memref<16x128xf32, #tpu.memory_space<vmem>>, vector<16x128xf32>
      tpu.vector_store %arg8[%c0_20, %c0_21], %31 {strides = array<i32>} : memref<16x128xf32, #tpu.memory_space<vmem>>, vector<16x128xf32>,
    } else {
    }
    %c0 = arith.constant 0 : index
    %c0_1 = arith.constant 0 : index
    %3 = vector.load %arg2[%c0, %c0_1] : memref<16x128xbf16, #tpu.memory_space<vmem>>, vector<16x128xbf16>
    %c0_2 = arith.constant 0 : index
    %c0_3 = arith.constant 0 : index
    %4 = vector.load %arg3[%c0_2, %c0_3] : memref<128x1024xbf16, #tpu.memory_space<vmem>>, vector<128x1024xbf16>
    %cst = arith.constant dense<0.000000e+00> : vector<16x1024xf32>
    %5 = tpu.matmul %3, %4, %cst {dimension_numbers = #tpu.dot_dimension_numbers<[1], [0], [0], [1], [0, 0, 1, 1], [], []>} : vector<16x128xbf16>, vector<128x1024xbf16>, vector<16x1024xf32> -> vector<16x1024xf32>
    %c0_4 = arith.constant 0 : index
    %c0_5 = arith.constant 0 : index
    %6 = vector.load %arg4[%c0_4, %c0_5] : memref<1x1024xf32, #tpu.memory_space<vmem>>, vector<1x1024xf32>
    %7 = vector.broadcast %6 : vector<1x1024xf32> to vector<16x1024xf32>
    %8 = arith.addf %5, %7 : vector<16x1024xf32>
    %cst_6 = arith.constant 5.000000e-01 : f32
    %9 = vector.broadcast %cst_6 : f32 to vector<16x1024xf32>
    %10 = arith.mulf %9, %8 : vector<16x1024xf32>
    %11 = arith.mulf %8, %8 : vector<16x1024xf32>
    %12 = arith.mulf %11, %8 : vector<16x1024xf32>
    %cst_7 = arith.constant 4.471500e-02 : f32
    %13 = vector.broadcast %cst_7 : f32 to vector<16x1024xf32>
    %14 = arith.mulf %13, %12 : vector<16x1024xf32>
    %15 = arith.addf %8, %14 : vector<16x1024xf32>
    %cst_8 = arith.constant 0.797884583 : f32
    %16 = vector.broadcast %cst_8 : f32 to vector<16x1024xf32>
    %17 = arith.mulf %16, %15 : vector<16x1024xf32>
    %18 = math.tanh %17 : vector<16x1024xf32>
    %cst_9 = arith.constant 1.000000e+00 : f32
    %19 = vector.broadcast %cst_9 : f32 to vector<16x1024xf32>
    %20 = arith.addf %19, %18 : vector<16x1024xf32>
    %21 = arith.mulf %10, %20 : vector<16x1024xf32>
    %c0_10 = arith.constant 0 : index
    %c0_11 = arith.constant 0 : index
    %22 = vector.load %arg8[%c0_10, %c0_11] : memref<16x128xf32, #tpu.memory_space<vmem>>, vector<16x128xf32>
    %23 = arith.truncf %21 : vector<16x1024xf32> to vector<16x1024xbf16>
    %c0_12 = arith.constant 0 : index
    %c0_13 = arith.constant 0 : index
    %24 = vector.load %arg5[%c0_12, %c0_13] : memref<1024x128xbf16, #tpu.memory_space<vmem>>, vector<1024x128xbf16>
    %cst_14 = arith.constant dense<0.000000e+00> : vector<16x128xf32>
    %25 = tpu.matmul %23, %24, %cst_14 {dimension_numbers = #tpu.dot_dimension_numbers<[1], [0], [0], [1], [0, 0, 1, 1], [], []>} : vector<16x1024xbf16>, vector<1024x128xbf16>, vector<16x128xf32> -> vector<16x128xf32>
    %26 = arith.addf %22, %25 : vector<16x128xf32>
    %c0_15 = arith.constant 0 : index
    %c0_16 = arith.constant 0 : index
    %27 = vector.load %arg8[%c0_15, %c0_16] : memref<16x128xf32, #tpu.memory_space<vmem>>, vector<16x128xf32>
    tpu.vector_store %arg8[%c0_15, %c0_16], %26 {strides = array<i32>} : memref<16x128xf32, #tpu.memory_space<vmem>>, vector<16x128xf32>,
    %c0_i32_17 = arith.constant 0 : i32
    %28 = arith.cmpi eq, %arg1, %c0_i32_17 : i32
    %29 = arith.extui %28 : i1 to i32
    %c0_i32_18 = arith.constant 0 : i32
    %30 = arith.cmpi ne, %29, %c0_i32_18 : i32
    scf.if %30 {
      %c0_19 = arith.constant 0 : index
      %c0_20 = arith.constant 0 : index
      %31 = vector.load %arg8[%c0_19, %c0_20] : memref<16x128xf32, #tpu.memory_space<vmem>>, vector<16x128xf32>
      %c0_21 = arith.constant 0 : index
      %c0_22 = arith.constant 0 : index
      %32 = vector.load %arg6[%c0_21, %c0_22] : memref<1x128xf32, #tpu.memory_space<vmem>>, vector<1x128xf32>
      %33 = vector.broadcast %32 : vector<1x128xf32> to vector<16x128xf32>
      %34 = arith.addf %31, %33 : vector<16x128xf32>
      %c0_23 = arith.constant 0 : index
      %c0_24 = arith.constant 0 : index
      %35 = vector.load %arg7[%c0_23, %c0_24] : memref<16x128xf32, #tpu.memory_space<vmem>>, vector<16x128xf32>
      tpu.vector_store %arg7[%c0_23, %c0_24], %34 {strides = array<i32>} : memref<16x128xf32, #tpu.memory_space<vmem>>, vector<16x128xf32>,
    } else {
    }
    return
  }
  func.func @transform_0(%arg0: i32, %arg1: i32) -> (i32, i32) {
    %c0_i32 = arith.constant 0 : i32
    %c0_i32_0 = arith.constant 0 : i32
    return %arg0, %c0_i32 : i32, i32
  }
  func.func @transform_1(%arg0: i32, %arg1: i32) -> (i32, i32) {
    %c0_i32 = arith.constant 0 : i32
    %c0_i32_0 = arith.constant 0 : i32
    return %c0_i32, %arg1 : i32, i32
  }
  func.func @transform_2(%arg0: i32, %arg1: i32) -> (i32, i32) {
    %c0_i32 = arith.constant 0 : i32
    %c0_i32_0 = arith.constant 0 : i32
    return %c0_i32, %arg1 : i32, i32
  }
  func.func @transform_3(%arg0: i32, %arg1: i32) -> (i32, i32) {
    %c0_i32 = arith.constant 0 : i32
    %c0_i32_0 = arith.constant 0 : i32
    return %arg1, %c0_i32 : i32, i32
  }
  func.func @transform_4(%arg0: i32, %arg1: i32) -> (i32, i32) {
    %c0_i32 = arith.constant 0 : i32
    %c0_i32_0 = arith.constant 0 : i32
    %c0_i32_1 = arith.constant 0 : i32
    return %c0_i32, %c0_i32_0 : i32, i32
  }
  func.func @transform_5(%arg0: i32, %arg1: i32) -> (i32, i32) {
    %c0_i32 = arith.constant 0 : i32
    %c0_i32_0 = arith.constant 0 : i32
    return %arg0, %c0_i32 : i32, i32
  }
}

</mosaic_0001>

<bundles_post_ra>
// kernel: tpu_custom_call.1
= control target key start
LH: loop header
LB: loop body
LE: loop exit
PB: predicated region body
PF: predicated region fallthrough
CT: control target
= control target key end

     0   :  { %10 = vsyncpa [#allocation4], 0  ;;  %s2262_s0 = inlined_call_operand.hbm [shape: bf16[16,128], index: 0, kind: input, shape index: {}]   ;;  %s2263_s1 = inlined_call_operand.hbm [shape: bf16[128,1024], index: 1, kind: input, shape index: {}]   ;;  %s2264_s2 = inlined_call_operand.hbm [shape: f32[1,1024], index: 2, kind: input, shape index: {}]   ;;  %s2265_s3 = inlined_call_operand.hbm [shape: bf16[1024,128], index: 3, kind: input, shape index: {}]   ;;  %s2266_s4 = inlined_call_operand.vmem [shape: f32[1,128], index: 4, kind: input, shape index: {}]   ;;  %s2267_s5 = inlined_call_operand.hbm [shape: f32[16,128], index: 5, kind: output, shape index: {}]  }
   0x1   :  { %11 = vsyncpa [#allocation7], 0 }
   0x2   :  { %12 = vsyncpa [#allocation10], 0 }
   0x3   :  { %13 = vsyncpa [#allocation5], 0  ;;  %s2001_s18 = smov [#allocation6]   ;;  %s1883_s22 = scalar_lea.hbm %s2263_s1, 8192 }
   0x4   :  { %s31_s19 = sshll.u32 %s2001_s18, 4  ;;  %p1884_p0 = scmp.ne.s32.totalorder %s2263_s1, %s1883_s22  ;;  %s32_s19 = int_to_ptr.vmem [resolvable:$true] %s31_s19 }
   0x5   :  { %p1887_p1 = scmp.lt.u32.totalorder %s1883_s22, %s2263_s1 }
   0x7   :  { %p1889_p2 = pnand %p1887_p1, %p1884_p0 }
   0x9   :  { %1892 = shalt.err (!%p1889_p2)
}
   0xa   :  { %s1893_s27 = scalar_lea.vmem %s32_s19, 8192  ;;  %p1898_p4 = scmp.lt.s32.totalorder %s32_s19, %s32_s19 }
   0xb   :  { %p1894_p3 = scmp.ne.s32.totalorder %s32_s19, %s1893_s27  ;;  %p1899_p5 = scmp.lt.s32.totalorder %s1893_s27, %s1893_s27 }
   0xd   :  { %p1900_p6 = por %p1899_p5, %p1898_p4 }
   0xf   :  { %p1901_p7 = pnand %p1900_p6, %p1894_p3 }
  0x11   :  { %1904 = shalt.err (!%p1901_p7)
}
  0x12   :  { %s2002_s28 = smov 512   ;;  %s2003_s29 = smov 32  }
  0x13   :  { %37 = dma.hbm_to_vmem [thread:$0]  %s2263_s1, 8192, %s32_s19, [#allocation7], %s2002_s28, %s2002_s28, %s2003_s29  }
  0x14   :  { %s2004_s7 = smov [#allocation3]   ;;  %s1905_s11 = scalar_lea.hbm %s2262_s0, 128 }
  0x15   :  { %s19_s8 = sshll.u32 %s2004_s7, 4  ;;  %p1906_p8 = scmp.ne.s32.totalorder %s2262_s0, %s1905_s11  ;;  %s20_s8 = int_to_ptr.vmem [resolvable:$true] %s19_s8 }
  0x16   :  { %p1909_p9 = scmp.lt.u32.totalorder %s1905_s11, %s2262_s0 }
  0x18   :  { %p1911_p10 = pnand %p1909_p9, %p1906_p8 }
  0x1a   :  { %1914 = shalt.err (!%p1911_p10)
}
  0x1b   :  { %s1915_s16 = scalar_lea.vmem %s20_s8, 128  ;;  %p1920_p12 = scmp.lt.s32.totalorder %s20_s8, %s20_s8 }
  0x1c   :  { %p1916_p11 = scmp.ne.s32.totalorder %s20_s8, %s1915_s16  ;;  %p1921_p13 = scmp.lt.s32.totalorder %s1915_s16, %s1915_s16 }
  0x1e   :  { %p1922_p0 = por %p1921_p13, %p1920_p12 }
  0x20   :  { %p1923_p1 = pnand %p1922_p0, %p1916_p11 }
  0x22   :  { %1926 = shalt.err (!%p1923_p1)
}
  0x23   :  { %s2005_s1 = smov 64   ;;  %s2006_s17 = smov 4  }
  0x24   :  { %25 = dma.hbm_to_vmem [thread:$0]  %s2262_s0, 128, %s20_s8, [#allocation4], %s2005_s1, %s2005_s1, %s2006_s17  }
  0x25   :  { %s2007_s20 = smov [#allocation8]   ;;  %s2008_s22 = smov [#allocation9]  }
  0x26   :  { %s44_s21 = sshll.u32 %s2007_s20, 4  ;;  %s53_s23 = sshll.u32 %s2008_s22, 4  ;;  %s45_s21 = int_to_ptr.vmem [resolvable:$true] %s44_s21  ;;  %s2070_s23 = int_to_ptr.vmem [resolvable:$true] %s53_s23 }
  0x27   :  { %s1927_s26 = scalar_lea.hbm %s2264_s2, 128 }
  0x28   :  { %p1928_p2 = scmp.ne.s32.totalorder %s2264_s2, %s1927_s26  ;;  %p1931_p3 = scmp.lt.u32.totalorder %s1927_s26, %s2264_s2 }
  0x2a   :  { %p1933_p4 = pnand %p1931_p3, %p1928_p2 }
  0x2c   :  { %1936 = shalt.err (!%p1933_p4)
}
  0x2d   :  { %s1937_s0 = scalar_lea.vmem %s45_s21, 128  ;;  %p1942_p6 = scmp.lt.s32.totalorder %s45_s21, %s45_s21 }
  0x2e   :  { %p1938_p5 = scmp.ne.s32.totalorder %s45_s21, %s1937_s0  ;;  %p1943_p7 = scmp.lt.s32.totalorder %s1937_s0, %s1937_s0 }
  0x30   :  { %p1944_p8 = por %p1943_p7, %p1942_p6 }
  0x32   :  { %p1945_p9 = pnand %p1944_p8, %p1938_p5 }
  0x34   :  { %1948 = shalt.err (!%p1945_p9)
}
  0x35   :  { %47 = dma.hbm_to_vmem [thread:$0]  %s2264_s2, 128, %s45_s21, [#allocation7]  }
  0x36   :  { %s1949_s10 = scalar_lea.hbm %s2265_s3, 8192 }
  0x37   :  { %p1950_p10 = scmp.ne.s32.totalorder %s2265_s3, %s1949_s10  ;;  %p1953_p11 = scmp.lt.u32.totalorder %s1949_s10, %s2265_s3 }
  0x39   :  { %p1955_p12 = pnand %p1953_p11, %p1950_p10 }
  0x3b   :  { %1958 = shalt.err (!%p1955_p12)
}
  0x3c   :  { %s1959_s15 = scalar_lea.vmem %s2070_s23, 8192  ;;  %p1964_p0 = scmp.lt.s32.totalorder %s2070_s23, %s2070_s23 }
  0x3d   :  { %p1960_p13 = scmp.ne.s32.totalorder %s2070_s23, %s1959_s15  ;;  %p1965_p1 = scmp.lt.s32.totalorder %s1959_s15, %s1959_s15 }
  0x3f   :  { %p1966_p2 = por %p1965_p1, %p1964_p0 }
  0x41   :  { %p1967_p3 = pnand %p1966_p2, %p1960_p13 }
  0x43   :  { %1970 = shalt.err (!%p1967_p3)
}
  0x44   :  { %59 = dma.hbm_to_vmem [thread:$0]  %s2265_s3, 8192, %s2070_s23, [#allocation10], %s2005_s1, %s2005_s1, %s2006_s17  }
  0x45   :  { %1993 = dma.done.wait [#allocation4], 128  }
  0x46   :  { %1994 = vsyncadd [#allocation4], 4294967168 }
  0x47   :  { %1995 = dma.done.wait [#allocation7], 8320  }
  0x48   :  { %1996 = vsyncadd [#allocation7], 4294958976 }
  0x49   :  { %1997 = dma.done.wait [#allocation10], 8192  }
  0x4a   :  { %1998 = vsyncadd [#allocation10], 4294959104  ;;  %v2009_v0 = vmov 0   ;;  %v83_v1 = vld [vmem:[#allocation6] sm:$0xff]  ;;  %v84_v3 = vld [vmem:[#allocation6 + $0x8] sm:$0xff]  ;;  %s2010_s17 = smov [#allocation11]  }
  0x4b   :  { %547 = vmatprep.mubr.bf16.mxu0 %v2009_v0  ;;  %590 = vmatprep.mubr.bf16.mxu1 %v2009_v0  ;;  %v87_v2 = vld [vmem:[#allocation6 + $0x20] sm:$0xff]  ;;  %v88_v5 = vld [vmem:[#allocation6 + $0x28] sm:$0xff]  ;;  %v85_v60 = vld [vmem:[#allocation6 + $0x10] sm:$0xff]  ;;  %s1542_s18 = sshll.u32 %s2010_s17, 4  ;;  %s1543_s18 = int_to_ptr.vmem [resolvable:$true] %s1542_s18 }
  0x4c   :  { %v1558_v4 = vcombine.high %v83_v1, %v87_v2  ;;  %v1557_v6 = vcombine.low %v83_v1, %v87_v2  ;;  %v91_v7 = vld [vmem:[#allocation6 + $0x40] sm:$0xff]  ;;  %v1560_v9 = vcombine.high %v84_v3, %v88_v5  ;;  %v1559_v10 = vcombine.low %v84_v3, %v88_v5  ;;  %v92_v12 = vld [vmem:[#allocation6 + $0x48] sm:$0xff]  ;;  %v89_v61 = vld [vmem:[#allocation6 + $0x30] sm:$0xff]  ;;  %s1971_s19 = scalar_lea.vmem %s1543_s18, 256  ;;  %p1976_p5 = scmp.lt.s32.totalorder %s1543_s18, %s1543_s18 }
  0x4d   :  { %v95_v8 = vld [vmem:[#allocation6 + $0x60] sm:$0xff]  ;;  %v96_v13 = vld [vmem:[#allocation6 + $0x68] sm:$0xff]  ;;  %v86_v1 = vld [vmem:[#allocation6 + $0x18] sm:$0xff]  ;;  %p1972_p4 = scmp.ne.s32.totalorder %s1543_s18, %s1971_s19  ;;  %p1977_p6 = scmp.lt.s32.totalorder %s1971_s19, %s1971_s19 }
  0x4e   :  { %v1566_v11 = vcombine.high %v91_v7, %v95_v8  ;;  %v99_v14 = vld [vmem:[#allocation6 + $0x80] sm:$0xff]  ;;  %515 = vmatprep.subr.bf16.mxu0 %v1558_v4  ;;  %v1568_v15 = vcombine.high %v92_v12, %v96_v13  ;;  %v100_v17 = vld [vmem:[#allocation6 + $0x88] sm:$0xff]  ;;  %558 = vmatprep.subr.bf16.mxu1 %v1560_v9  ;;  %v1565_v19 = vcombine.low %v91_v7, %v95_v8  ;;  %v90_v2 = vld [vmem:[#allocation6 + $0x38] sm:$0xff] }
  0x4f   :  { %v103_v16 = vld [vmem:[#allocation6 + $0xa0] sm:$0xff]  ;;  %v104_v18 = vld [vmem:[#allocation6 + $0xa8] sm:$0xff]  ;;  %516 = vmatpush1.bf16.msra.mxu0 %v1557_v6  ;;  %559 = vmatpush1.bf16.msra.mxu1 %v1559_v10  ;;  %v1567_v20 = vcombine.low %v92_v12, %v96_v13  ;;  %v93_v5 = vld [vmem:[#allocation6 + $0x50] sm:$0xff]  ;;  %v1562_v9 = vcombine.high %v85_v60, %v89_v61  ;;  %v1564_v12 = vcombine.high %v86_v1, %v90_v2  ;;  %p1978_p7 = por %p1977_p6, %p1976_p5 }
  0x50   :  { %517 = vmatprep.subr.bf16.mxu0 %v1566_v11  ;;  %v1574_v21 = vcombine.high %v99_v14, %v103_v16  ;;  %560 = vmatprep.subr.bf16.mxu1 %v1568_v15  ;;  %v1576_v22 = vcombine.high %v100_v17, %v104_v18  ;;  %v107_v23 = vld [vmem:[#allocation6 + $0xc0] sm:$0xff]  ;;  %v108_v25 = vld [vmem:[#allocation6 + $0xc8] sm:$0xff]  ;;  %v1573_v27 = vcombine.low %v99_v14, %v103_v16  ;;  %v97_v6 = vld [vmem:[#allocation6 + $0x70] sm:$0xff] }
  0x51   :  { %v111_v24 = vld [vmem:[#allocation6 + $0xe0] sm:$0xff]  ;;  %v112_v26 = vld [vmem:[#allocation6 + $0xe8] sm:$0xff]  ;;  %v1575_v28 = vcombine.low %v100_v17, %v104_v18  ;;  %v2106_v8 = vld [vmem:[#allocation3] sm:$0xff]   ;;  %v1561_v13 = vcombine.low %v85_v60, %v89_v61  ;;  %v1563_v16 = vcombine.low %v86_v1, %v90_v2  ;;  %v1570_v17 = vcombine.high %v93_v5, %v97_v6  ;;  %p1979_p8 = pnand %p1978_p7, %p1972_p4 }
  0x52   :  { %v1582_v29 = vcombine.high %v107_v23, %v111_v24  ;;  %v1584_v30 = vcombine.high %v108_v25, %v112_v26  ;;  %v115_v31 = vld [vmem:[#allocation6 + $0x100] sm:$0xff]  ;;  %v116_v33 = vld [vmem:[#allocation6 + $0x108] sm:$0xff]  ;;  %v1581_v35 = vcombine.low %v107_v23, %v111_v24  ;;  %v1583_v36 = vcombine.low %v108_v25, %v112_v26  ;;  %v94_v10 = vld [vmem:[#allocation6 + $0x58] sm:$0xff] }
  0x53   :  { %518 = vmatpush1.bf16.msra.mxu0 %v1565_v19  ;;  %561 = vmatpush1.bf16.msra.mxu1 %v1567_v20  ;;  %v119_v32 = vld [vmem:[#allocation6 + $0x120] sm:$0xff]  ;;  %v120_v34 = vld [vmem:[#allocation6 + $0x128] sm:$0xff]  ;;  %v98_v11 = vld [vmem:[#allocation6 + $0x78] sm:$0xff] }
  0x54   :  { %519 = vmatprep.subr.bf16.mxu0 %v1574_v21  ;;  %562 = vmatprep.subr.bf16.mxu1 %v1576_v22  ;;  %v1590_v37 = vcombine.high %v115_v31, %v119_v32  ;;  %v1592_v38 = vcombine.high %v116_v33, %v120_v34  ;;  %v123_v39 = vld [vmem:[#allocation6 + $0x140] sm:$0xff]  ;;  %v124_v41 = vld [vmem:[#allocation6 + $0x148] sm:$0xff]  ;;  %v1589_v43 = vcombine.low %v115_v31, %v119_v32  ;;  %v101_v14 = vld [vmem:[#allocation6 + $0x90] sm:$0xff] }
  0x55   :  { %v127_v40 = vld [vmem:[#allocation6 + $0x160] sm:$0xff]  ;;  %v128_v42 = vld [vmem:[#allocation6 + $0x168] sm:$0xff]  ;;  %v1591_v44 = vcombine.low %v116_v33, %v120_v34  ;;  %v105_v15 = vld [vmem:[#allocation6 + $0xb0] sm:$0xff]  ;;  %v1572_v20 = vcombine.high %v94_v10, %v98_v11  ;;  %v1569_v21 = vcombine.low %v93_v5, %v97_v6  ;;  %v1571_v24 = vcombine.low %v94_v10, %v98_v11 }
  0x56   :  { %v1598_v45 = vcombine.high %v123_v39, %v127_v40  ;;  %v1600_v46 = vcombine.high %v124_v41, %v128_v42  ;;  %v131_v47 = vld [vmem:[#allocation6 + $0x180] sm:$0xff]  ;;  %v132_v49 = vld [vmem:[#allocation6 + $0x188] sm:$0xff]  ;;  %v1597_v51 = vcombine.low %v123_v39, %v127_v40  ;;  %v1599_v52 = vcombine.low %v124_v41, %v128_v42  ;;  %v102_v18 = vld [vmem:[#allocation6 + $0x98] sm:$0xff] }
  0x57   :  { %520 = vmatpush1.bf16.msra.mxu0 %v1573_v27  ;;  %563 = vmatpush1.bf16.msra.mxu1 %v1575_v28  ;;  %v135_v48 = vld [vmem:[#allocation6 + $0x1a0] sm:$0xff]  ;;  %v136_v50 = vld [vmem:[#allocation6 + $0x1a8] sm:$0xff]  ;;  %v106_v19 = vld [vmem:[#allocation6 + $0xb8] sm:$0xff]  ;;  %v1578_v25 = vcombine.high %v101_v14, %v105_v15 }
  0x58   :  { %521 = vmatprep.subr.bf16.mxu0 %v1582_v29  ;;  %564 = vmatprep.subr.bf16.mxu1 %v1584_v30  ;;  %v1606_v53 = vcombine.high %v131_v47, %v135_v48  ;;  %v139_v54 = vld [vmem:[#allocation6 + $0x1c0] sm:$0xff]  ;;  %v1608_v56 = vcombine.high %v132_v49, %v136_v50  ;;  %v140_v57 = vld [vmem:[#allocation6 + $0x1c8] sm:$0xff]  ;;  %v1605_v59 = vcombine.low %v131_v47, %v135_v48  ;;  %v109_v22 = vld [vmem:[#allocation6 + $0xd0] sm:$0xff] }
  0x59   :  { %v143_v55 = vld [vmem:[#allocation6 + $0x1e0] sm:$0xff]  ;;  %v144_v58 = vld [vmem:[#allocation6 + $0x1e8] sm:$0xff]  ;;  %v1607_v62 = vcombine.low %v132_v49, %v136_v50  ;;  %v113_v23 = vld [vmem:[#allocation6 + $0xf0] sm:$0xff]  ;;  %v1580_v28 = vcombine.high %v102_v18, %v106_v19  ;;  %v1577_v29 = vcombine.low %v101_v14, %v105_v15  ;;  %v1579_v32 = vcombine.low %v102_v18, %v106_v19 }
  0x5a   :  { %v1614_v63 = vcombine.high %v139_v54, %v143_v55  ;;  %v1616_v3 = vcombine.high %v140_v57, %v144_v58  ;;  %v1613_v4 = vcombine.low %v139_v54, %v143_v55  ;;  %v1615_v7 = vcombine.low %v140_v57, %v144_v58  ;;  %v110_v26 = vld [vmem:[#allocation6 + $0xd8] sm:$0xff]  ;;  %v117_v30 = vld [vmem:[#allocation6 + $0x110] sm:$0xff]  ;;  %v1789_v5 = vld [vmem:[#allocation9] sm:$0xff]  }
  0x5b   :  { %522 = vmatpush1.bf16.msra.mxu0 %v1581_v35  ;;  %565 = vmatpush1.bf16.msra.mxu1 %v1583_v36  ;;  %v114_v27 = vld [vmem:[#allocation6 + $0xf8] sm:$0xff]  ;;  %v121_v31 = vld [vmem:[#allocation6 + $0x130] sm:$0xff]  ;;  %v1586_v33 = vcombine.high %v109_v22, %v113_v23  ;;  %v1790_v6 = vld [vmem:[#allocation9 + $0x80] sm:$0xff]  }
  0x5c   :  { %523 = vmatprep.subr.bf16.mxu0 %v1590_v37  ;;  %566 = vmatprep.subr.bf16.mxu1 %v1592_v38  ;;  %v118_v34 = vld [vmem:[#allocation6 + $0x118] sm:$0xff]  ;;  %v1588_v36 = vcombine.high %v110_v26, %v114_v27  ;;  %v1585_v37 = vcombine.low %v109_v22, %v113_v23  ;;  %v125_v38 = vld [vmem:[#allocation6 + $0x150] sm:$0xff]  ;;  %v1587_v40 = vcombine.low %v110_v26, %v114_v27  ;;  %v1799_v15 = vld [vmem:[#allocation9 + $0x58] sm:$0xff]  }
  0x5d   :  { %v122_v35 = vld [vmem:[#allocation6 + $0x138] sm:$0xff]  ;;  %v129_v39 = vld [vmem:[#allocation6 + $0x170] sm:$0xff]  ;;  %v1802_v18 = vld [vmem:[#allocation9 + $0x98] sm:$0xff]  }
  0x5e   :  { %v126_v41 = vld [vmem:[#allocation6 + $0x158] sm:$0xff]  ;;  %v1595_v47 = vcombine.low %v118_v34, %v122_v35  ;;  %v1602_v48 = vcombine.high %v125_v38, %v129_v39  ;;  %v145_v54 = vld [vmem:[#allocation6 + $0x1f0] sm:$0xff]  ;;  %v1803_v19 = vld [vmem:[#allocation9 + $0x60] sm:$0xff]  }
  0x5f   :  { %524 = vmatpush1.bf16.msra.mxu0 %v1589_v43  ;;  %567 = vmatpush1.bf16.msra.mxu1 %v1591_v44  ;;  %v130_v42 = vld [vmem:[#allocation6 + $0x178] sm:$0xff]  ;;  %v1596_v43 = vcombine.high %v118_v34, %v122_v35  ;;  %v1593_v44 = vcombine.low %v117_v30, %v121_v31  ;;  %v1793_v10 = vld [vmem:[#allocation9 + $0x8] sm:$0xff]   ;;  %v1806_v22 = vld [vmem:[#allocation9 + $0xa0] sm:$0xff]  }
  0x60   :  { %525 = vmatprep.subr.bf16.mxu0 %v1598_v45  ;;  %568 = vmatprep.subr.bf16.mxu1 %v1600_v46  ;;  %v133_v45 = vld [vmem:[#allocation6 + $0x190] sm:$0xff]  ;;  %v134_v49 = vld [vmem:[#allocation6 + $0x198] sm:$0xff]  ;;  %v1603_v55 = vcombine.low %v126_v41, %v130_v42  ;;  %v1818_v34 = vld [vmem:[#allocation9 + $0xb8] sm:$0xff]  }
  0x61   :  { %v137_v46 = vld [vmem:[#allocation6 + $0x1b0] sm:$0xff]  ;;  %v138_v50 = vld [vmem:[#allocation6 + $0x1b8] sm:$0xff]  ;;  %v1819_v35 = vld [vmem:[#allocation9 + $0x140] sm:$0xff]  }
  0x62   :  { %v142_v57 = vld [vmem:[#allocation6 + $0x1d8] sm:$0xff]  ;;  %v1609_v60 = vcombine.low %v133_v45, %v137_v46  ;;  %v1611_v61 = vcombine.low %v134_v49, %v138_v50  ;;  %v1794_v11 = vld [vmem:[#allocation9 + $0x88] sm:$0xff]  }
  0x63   :  { %526 = vmatpush1.bf16.msra.mxu0 %v1597_v51  ;;  %569 = vmatpush1.bf16.msra.mxu1 %v1599_v52  ;;  %v1604_v51 = vcombine.high %v126_v41, %v130_v42  ;;  %v1601_v52 = vcombine.low %v125_v38, %v129_v39  ;;  %v146_v58 = vld [vmem:[#allocation6 + $0x1f8] sm:$0xff]  ;;  %v1807_v23 = vld [vmem:[#allocation9 + $0x68] sm:$0xff]  }
  0x64   :  { %527 = vmatprep.subr.bf16.mxu0 %v1606_v53  ;;  %570 = vmatprep.subr.bf16.mxu1 %v1608_v56  ;;  %v141_v53 = vld [vmem:[#allocation6 + $0x1d0] sm:$0xff]  ;;  %v1610_v56 = vcombine.high %v133_v45, %v137_v46  ;;  %v1619_v2 = vcombine.low %v142_v57, %v146_v58  ;;  %v1797_v14 = vld [vmem:[#allocation9 + $0x10] sm:$0xff]  }
  0x65   :  { %v1617_v1 = vcombine.low %v141_v53, %v145_v54  ;;  %v1810_v26 = vld [vmem:[#allocation9 + $0xa8] sm:$0xff]   ;;  %v1811_v27 = vld [vmem:[#allocation9 + $0x70] sm:$0xff]  }
  0x67   :  { %528 = vmatpush1.bf16.msra.mxu0 %v1605_v59  ;;  %571 = vmatpush1.bf16.msra.mxu1 %v1607_v62  ;;  %v1612_v59 = vcombine.high %v134_v49, %v138_v50  ;;  %v1618_v62 = vcombine.high %v141_v53, %v145_v54 }
  0x68   :  { %529 = vmatprep.subr.bf16.mxu0 %v1614_v63  ;;  %572 = vmatprep.subr.bf16.mxu1 %v1616_v3  ;;  %v1620_v63 = vcombine.high %v142_v57, %v146_v58  ;;  %v1787_v3 = vld [vmem:[#allocation9 + $0x40] sm:$0xff]  }
  0x6b   :  { %530 = vmatpush1.bf16.msra.mxu0 %v1613_v4  ;;  %573 = vmatpush1.bf16.msra.mxu1 %v1615_v7  ;;  %v1788_v4 = vld [vmem:[#allocation9 + $0xc0] sm:$0xff]   ;;  %v1791_v7 = vld [vmem:[#allocation9 + $0x48] sm:$0xff]  }
  0x6c   :  { %601 = vmatprep.subr.bf16.mxu0 %v1562_v9  ;;  %644 = vmatprep.subr.bf16.mxu1 %v1564_v12  ;;  %v1792_v9 = vld [vmem:[#allocation9 + $0xc8] sm:$0xff]   ;;  %v1795_v12 = vld [vmem:[#allocation9 + $0x50] sm:$0xff]  }
  0x6e   :  { %548 = vmatmul.mubr.bf16.vlgmr.msra.gmra.mrb[0].mxu0 %v2106_v8  ;;  %591 = vmatmul.mubr.bf16.vlgmr.msra.gmra.mrb[0].mxu1 %v2106_v8 }
  0x6f   :  { %602 = vmatpush1.bf16.msra.mxu0 %v1561_v13  ;;  %645 = vmatpush1.bf16.msra.mxu1 %v1563_v16  ;;  %v1796_v13 = vld [vmem:[#allocation9 + $0xd0] sm:$0xff]   ;;  %v1800_v16 = vld [vmem:[#allocation9 + $0xd8] sm:$0xff]  }
  0x70   :  { %603 = vmatprep.subr.bf16.mxu0 %v1570_v17  ;;  %646 = vmatprep.subr.bf16.mxu1 %v1572_v20  ;;  %v1801_v17 = vld [vmem:[#allocation9 + $0x18] sm:$0xff]   ;;  %v1804_v20 = vld [vmem:[#allocation9 + $0xe0] sm:$0xff]  }
  0x71   :  { %633 = vmatprep.mubr.bf16.mxu0 %v2009_v0  ;;  %676 = vmatprep.mubr.bf16.mxu1 %v2009_v0  ;;  %v1594_v0 = vcombine.high %v117_v30, %v121_v31  ;;  %v1814_v30 = vld [vmem:[#allocation9 + $0xb0] sm:$0xff]   ;;  %v1815_v31 = vld [vmem:[#allocation9 + $0x78] sm:$0xff]  }
  0x73   :  { %604 = vmatpush1.bf16.msra.mxu0 %v1569_v21  ;;  %647 = vmatpush1.bf16.msra.mxu1 %v1571_v24  ;;  %v1805_v21 = vld [vmem:[#allocation9 + $0x20] sm:$0xff]   ;;  %v1808_v24 = vld [vmem:[#allocation9 + $0xe8] sm:$0xff]  }
  0x74   :  { %605 = vmatprep.subr.bf16.mxu0 %v1578_v25  ;;  %648 = vmatprep.subr.bf16.mxu1 %v1580_v28  ;;  %v1809_v25 = vld [vmem:[#allocation9 + $0x28] sm:$0xff]   ;;  %v1812_v28 = vld [vmem:[#allocation9 + $0xf0] sm:$0xff]  }
  0x77   :  { %606 = vmatpush1.bf16.msra.mxu0 %v1577_v29  ;;  %649 = vmatpush1.bf16.msra.mxu1 %v1579_v32  ;;  %v1813_v29 = vld [vmem:[#allocation9 + $0x30] sm:$0xff]   ;;  %v1816_v32 = vld [vmem:[#allocation9 + $0xf8] sm:$0xff]  }
  0x78   :  { %607 = vmatprep.subr.bf16.mxu0 %v1586_v33  ;;  %650 = vmatprep.subr.bf16.mxu1 %v1588_v36  ;;  %v1817_v33 = vld [vmem:[#allocation9 + $0x38] sm:$0xff]   ;;  %v1820_v36 = vld [vmem:[#allocation9 + $0x1c0] sm:$0xff]  }
  0x7b   :  { %608 = vmatpush1.bf16.msra.mxu0 %v1585_v37  ;;  %651 = vmatpush1.bf16.msra.mxu1 %v1587_v40  ;;  %v149_v37 = vlaneseq  ;;  %v2117_v40 = vld [vmem:[#allocation8] sm:$0xff] }
  0x7c   :  { %609 = vmatprep.subr.bf16.mxu0 %v1594_v0  ;;  %652 = vmatprep.subr.bf16.mxu1 %v1596_v43 }
  0x7d   :  { %v2114_v38 = vshrl.u32 %v149_v37, 7 }
  0x7f   :  { %610 = vmatpush1.bf16.msra.mxu0 %v1593_v44  ;;  %653 = vmatpush1.bf16.msra.mxu1 %v1595_v47  ;;  %v151_v39 = vsub.s32 0, %v2114_v38  ;;  %v159_v0 = vsub.s32 2, %v2114_v38  ;;  %v155_v41 = vsub.s32 1, %v2114_v38  ;;  %v163_v42 = vsub.s32 3, %v2114_v38 }
  0x80   :  { %611 = vmatprep.subr.bf16.mxu0 %v1602_v48  ;;  %654 = vmatprep.subr.bf16.mxu1 %v1604_v51 }
  0x81   :  { %v152_v43 = vrot.slane %v2117_v40, %v151_v39  ;;  %v160_v44 = vrot.slane %v2117_v40, %v159_v0  ;;  %v156_v45 = vrot.slane %v2117_v40, %v155_v41  ;;  %v164_v46 = vrot.slane %v2117_v40, %v163_v42 }
  0x82   :  { %v167_v41 = vsub.s32 4, %v2114_v38  ;;  %v175_v42 = vsub.s32 6, %v2114_v38 }
  0x83   :  { %612 = vmatpush1.bf16.msra.mxu0 %v1601_v52  ;;  %655 = vmatpush1.bf16.msra.mxu1 %v1603_v55 }
  0x84   :  { %613 = vmatprep.subr.bf16.mxu0 %v1610_v56  ;;  %656 = vmatprep.subr.bf16.mxu1 %v1612_v59 }
  0x87   :  { %614 = vmatpush1.bf16.msra.mxu0 %v1609_v60  ;;  %657 = vmatpush1.bf16.msra.mxu1 %v1611_v61 }
  0x88   :  { %615 = vmatprep.subr.bf16.mxu0 %v1618_v62  ;;  %658 = vmatprep.subr.bf16.mxu1 %v1620_v63 }
  0x8b   :  { %616 = vmatpush1.bf16.msra.mxu0 %v1617_v1  ;;  %659 = vmatpush1.bf16.msra.mxu1 %v1619_v2 }
  0x8c   :  { %1686 = vmatprep.subr.bf16.mxu0 %v1787_v3  ;;  %1708 = vmatprep.subr.bf16.mxu1 %v1788_v4 }
  0x8e   :  { %634 = vmatmul.mubr.bf16.vlgmr.msra.gmra.mrb[4].mxu0 %v2106_v8  ;;  %677 = vmatmul.mubr.bf16.vlgmr.msra.gmra.mrb[4].mxu1 %v2106_v8  ;;  %v1798_v8 = vld [vmem:[#allocation9 + $0x90] sm:$0xff]  }
  0x8f   :  { %1687 = vmatpush3.bf16.msra.mxu0 %v1789_v5  ;;  %1709 = vmatpush3.bf16.msra.mxu1 %v1790_v6 }
  0x90   :  { %1688 = vmatprep.subr.bf16.mxu0 %v1791_v7  ;;  %1710 = vmatprep.subr.bf16.mxu1 %v1792_v9 }
  0x93   :  { %1689 = vmatpush3.bf16.msra.mxu0 %v1793_v10  ;;  %1711 = vmatpush3.bf16.msra.mxu1 %v1794_v11 }
  0x94   :  { %1690 = vmatprep.subr.bf16.mxu0 %v1795_v12  ;;  %1712 = vmatprep.subr.bf16.mxu1 %v1796_v13 }
  0x97   :  { %1691 = vmatpush3.bf16.msra.mxu0 %v1797_v14  ;;  %1713 = vmatpush3.bf16.msra.mxu1 %v1798_v8 }
  0x98   :  { %1692 = vmatprep.subr.bf16.mxu0 %v1799_v15  ;;  %1714 = vmatprep.subr.bf16.mxu1 %v1800_v16 }
  0x9b   :  { %1693 = vmatpush3.bf16.msra.mxu0 %v1801_v17  ;;  %1715 = vmatpush3.bf16.msra.mxu1 %v1802_v18 }
  0x9c   :  { %1694 = vmatprep.subr.bf16.mxu0 %v1803_v19  ;;  %1716 = vmatprep.subr.bf16.mxu1 %v1804_v20 }
  0x9f   :  { %1695 = vmatpush3.bf16.msra.mxu0 %v1805_v21  ;;  %1717 = vmatpush3.bf16.msra.mxu1 %v1806_v22 }
  0xa0   :  { %1696 = vmatprep.subr.bf16.mxu0 %v1807_v23  ;;  %1718 = vmatprep.subr.bf16.mxu1 %v1808_v24 }
  0xa3   :  { %1697 = vmatpush3.bf16.msra.mxu0 %v1809_v25  ;;  %1719 = vmatpush3.bf16.msra.mxu1 %v1810_v26 }
  0xa4   :  { %1698 = vmatprep.subr.bf16.mxu0 %v1811_v27  ;;  %1720 = vmatprep.subr.bf16.mxu1 %v1812_v28 }
  0xa7   :  { %1699 = vmatpush3.bf16.msra.mxu0 %v1813_v29  ;;  %1721 = vmatpush3.bf16.msra.mxu1 %v1814_v30 }
  0xa8   :  { %1700 = vmatprep.subr.bf16.mxu0 %v1815_v31  ;;  %1722 = vmatprep.subr.bf16.mxu1 %v1816_v32 }
  0xab   :  { %1701 = vmatpush3.bf16.msra.mxu0 %v1817_v33  ;;  %1723 = vmatpush3.bf16.msra.mxu1 %v1818_v34 }
  0xac   :  { %1730 = vmatprep.subr.bf16.mxu0 %v1819_v35  ;;  %1752 = vmatprep.subr.bf16.mxu1 %v1820_v36 }
 0x141   :  { %v549_v47 = vpop.f32.mrb[0].mxu0  ;;  %v592_v49 = vpop.f32.mrb[0].mxu1 }
 0x142   :  { %v2126_v48 = vadd.f32 %v549_v47, %v152_v43  ;;  %v551_v50 = vpop.f32.mrb[1].mxu0  ;;  %v2128_v51 = vadd.f32 %v592_v49, %v160_v44  ;;  %v594_v53 = vpop.f32.mrb[1].mxu1 }
 0x143   :  { %v2130_v52 = vadd.f32 %v551_v50, %v156_v45  ;;  %v553_v54 = vpop.f32.mrb[2].mxu0  ;;  %v2134_v56 = vadd.f32 %v594_v53, %v164_v46  ;;  %v596_v58 = vpop.f32.mrb[2].mxu1  ;;  %v168_v50 = vrot.slane %v2117_v40, %v167_v41  ;;  %v176_v53 = vrot.slane %v2117_v40, %v175_v42 }
 0x144   :  { %v703_v55 = vmul.f32 %v2126_v48, %v2126_v48  ;;  %v2136_v57 = vadd.f32 %v553_v54, %v152_v43  ;;  %v555_v59 = vpop.f32.mrb[3].mxu0  ;;  %v705_v60 = vmul.f32 %v2128_v51, %v2128_v51  ;;  %v2142_v62 = vadd.f32 %v596_v58, %v160_v44  ;;  %v598_v63 = vpop.f32.mrb[3].mxu1 }
 0x145   :  { %v704_v61 = vmul.f32 %v2130_v52, %v2130_v52  ;;  %v706_v2 = vmul.f32 %v2134_v56, %v2134_v56  ;;  %v556_v11 = vadd.f32 %v555_v59, %v156_v45  ;;  %v2156_v8 = vadd.f32 %v598_v63, %v164_v46 }
 0x146   :  { %v719_v1 = vmul.f32 %v703_v55, %v2126_v48  ;;  %v711_v3 = vmul.f32 %v2136_v57, %v2136_v57  ;;  %v721_v4 = vmul.f32 %v705_v60, %v2128_v51  ;;  %v713_v6 = vmul.f32 %v2142_v62, %v2142_v62 }
 0x147   :  { %v720_v5 = vmul.f32 %v704_v61, %v2130_v52  ;;  %v722_v9 = vmul.f32 %v706_v2, %v2134_v56  ;;  %v712_v18 = vmul.f32 %v556_v11, %v556_v11  ;;  %v714_v22 = vmul.f32 %v2156_v8, %v2156_v8 }
 0x148   :  { %v735_v7 = vmul.f32 0.044715, %v719_v1  ;;  %v727_v10 = vmul.f32 %v711_v3, %v2136_v57  ;;  %v737_v12 = vmul.f32 0.044715, %v721_v4  ;;  %v729_v14 = vmul.f32 %v713_v6, %v2142_v62 }
 0x149   :  { %v736_v13 = vmul.f32 0.044715, %v720_v5  ;;  %v738_v16 = vmul.f32 0.044715, %v722_v9  ;;  %v728_v26 = vmul.f32 %v712_v18, %v556_v11  ;;  %v730_v30 = vmul.f32 %v714_v22, %v2156_v8 }
 0x14a   :  { %v751_v15 = vadd.f32 %v735_v7, %v2126_v48  ;;  %v743_v17 = vmul.f32 0.044715, %v727_v10  ;;  %v753_v19 = vadd.f32 %v737_v12, %v2128_v51  ;;  %v745_v21 = vmul.f32 0.044715, %v729_v14 }
 0x14b   :  { %v752_v20 = vadd.f32 %v736_v13, %v2130_v52  ;;  %v754_v24 = vadd.f32 %v738_v16, %v2134_v56  ;;  %v744_v33 = vmul.f32 0.044715, %v728_v26  ;;  %v746_v35 = vmul.f32 0.044715, %v730_v30 }
 0x14c   :  { %v767_v23 = vmul.f32 0.7978846, %v751_v15  ;;  %v759_v25 = vadd.f32 %v743_v17, %v2136_v57  ;;  %v769_v27 = vmul.f32 0.7978846, %v753_v19  ;;  %v761_v29 = vadd.f32 %v745_v21, %v2142_v62 }
 0x14d   :  { %v768_v28 = vmul.f32 0.7978846, %v752_v20  ;;  %v770_v31 = vmul.f32 0.7978846, %v754_v24  ;;  %v760_v36 = vadd.f32 %v744_v33, %v556_v11  ;;  %v762_v37 = vadd.f32 %v746_v35, %v2156_v8  ;;  %v1822_v33 = vld [vmem:[#allocation9 + $0x180] sm:$0xff]  }
 0x14e   :  { %1851 = vtanh.f32 %v767_v23  ;;  %v775_v32 = vmul.f32 0.7978846, %v759_v25  ;;  %v777_v34 = vmul.f32 0.7978846, %v761_v29  ;;  %v171_v43 = vsub.s32 5, %v2114_v38 }
 0x14f   :  { %1853 = vtanh.f32 %v769_v27  ;;  %v776_v39 = vmul.f32 0.7978846, %v760_v36  ;;  %v778_v0 = vmul.f32 0.7978846, %v762_v37  ;;  %v179_v45 = vsub.s32 7, %v2114_v38  ;;  %v1821_v27 = vld [vmem:[#allocation9 + $0x100] sm:$0xff]  }
 0x150   :  { %1855 = vtanh.f32 %v768_v28  ;;  %v2175_v54 = vrot.slane %v2117_v40, %v171_v43  ;;  %v687_v59 = vmul.f32 0.5, %v2126_v48  ;;  %v689_v60 = vmul.f32 0.5, %v2128_v51 }
 0x151   :  { %1857 = vtanh.f32 %v770_v31  ;;  %v2180_v61 = vrot.slane %v2117_v40, %v179_v45  ;;  %v695_v1 = vmul.f32 0.5, %v2136_v57  ;;  %v697_v2 = vmul.f32 0.5, %v2142_v62 }
 0x152   :  { %1859 = vtanh.f32 %v775_v32  ;;  %v688_v6 = vmul.f32 0.5, %v2130_v52  ;;  %v696_v7 = vmul.f32 0.5, %v556_v11  ;;  %v690_v51 = vmul.f32 0.5, %v2134_v56 }
 0x153   :  { %1861 = vtanh.f32 %v777_v34  ;;  %v698_v14 = vmul.f32 0.5, %v2156_v8  ;;  %v1823_v34 = vld [vmem:[#allocation9 + $0x148] sm:$0xff]  }
 0x154   :  { %1863 = vtanh.f32 %v776_v39 }
 0x155   :  { %1865 = vtanh.f32 %v778_v0  ;;  %v1824_v0 = vld [vmem:[#allocation9 + $0x1c8] sm:$0xff]  }
 0x158   :  { %v1852_v44 = vpop.eup %1851 }
 0x159   :  { %v1854_v46 = vpop.eup %1853  ;;  %v799_v55 = vadd.f32 1.0, %v1852_v44 }
 0x15a   :  { %v1856_v47 = vpop.eup %1855  ;;  %v801_v38 = vadd.f32 1.0, %v1854_v46 }
 0x15b   :  { %v1858_v49 = vpop.eup %1857  ;;  %v800_v3 = vadd.f32 1.0, %v1856_v47  ;;  %v815_v40 = vmul.f32 %v799_v55, %v687_v59  ;;  %v1825_v47 = vld [vmem:[#allocation9 + $0x108] sm:$0xff]  }
 0x15c   :  { %v1860_v58 = vpop.eup %1859  ;;  %v802_v9 = vadd.f32 1.0, %v1858_v49  ;;  %v817_v57 = vmul.f32 %v801_v38, %v689_v60 }
 0x15d   :  { %v1862_v63 = vpop.eup %1861  ;;  %v807_v4 = vadd.f32 1.0, %v1860_v58  ;;  %v816_v17 = vmul.f32 %v800_v3, %v688_v6  ;;  %v1827_v58 = vld [vmem:[#allocation9 + $0x150] sm:$0xff]  }
 0x15e   :  { %v1864_v5 = vpop.eup %1863  ;;  %v809_v10 = vadd.f32 1.0, %v1862_v63  ;;  %v818_v21 = vmul.f32 %v802_v9, %v690_v51 }
 0x15f   :  { %v1866_v48 = vpop.eup %1865  ;;  %v808_v12 = vadd.f32 1.0, %v1864_v5  ;;  %v823_v13 = vmul.f32 %v807_v4, %v695_v1  ;;  %v1828_v1 = vld [vmem:[#allocation9 + $0x1d0] sm:$0xff]  }
 0x160   :  { %v810_v15 = vadd.f32 1.0, %v1866_v48  ;;  %v825_v16 = vmul.f32 %v809_v10, %v697_v2 }
 0x161   :  { %v635_v62 = vpop.f32.mrb[4].mxu0  ;;  %v824_v18 = vmul.f32 %v808_v12, %v696_v7  ;;  %v833_v19 = vpack.c.bf16 %v823_v13, %v815_v40  ;;  %v678_v52 = vpop.f32.mrb[4].mxu1  ;;  %v1831_v13 = vld [vmem:[#allocation9 + $0x158] sm:$0xff]  }
 0x162   :  { %v2187_v20 = vadd.f32 %v635_v62, %v168_v50  ;;  %v637_v11 = vpop.f32.mrb[5].mxu0  ;;  %v826_v22 = vmul.f32 %v810_v15, %v698_v14  ;;  %v835_v23 = vpack.c.bf16 %v825_v16, %v817_v57  ;;  %v2189_v24 = vadd.f32 %v678_v52, %v176_v53  ;;  %v680_v8 = vpop.f32.mrb[5].mxu1  ;;  %v1832_v62 = vld [vmem:[#allocation9 + $0x1d8] sm:$0xff]  }
 0x163   :  { %v2192_v56 = vadd.f32 %v637_v11, %v2175_v54  ;;  %v834_v25 = vpack.c.bf16 %v824_v18, %v816_v17  ;;  %v639_v26 = vpop.f32.mrb[6].mxu0  ;;  %v2197_v29 = vadd.f32 %v680_v8, %v2180_v61  ;;  %v682_v31 = vpop.f32.mrb[6].mxu1  ;;  %v1834_v8 = vld [vmem:[#allocation9 + $0x198] sm:$0xff]  }
 0x164   :  { %v707_v28 = vmul.f32 %v2187_v20, %v2187_v20  ;;  %v836_v30 = vpack.c.bf16 %v826_v22, %v818_v21  ;;  %v641_v32 = vpop.f32.mrb[7].mxu0  ;;  %v709_v35 = vmul.f32 %v2189_v24, %v2189_v24  ;;  %v2203_v37 = vadd.f32 %v639_v26, %v168_v50  ;;  %v684_v39 = vpop.f32.mrb[7].mxu1  ;;  %v1833_v21 = vld [vmem:[#allocation9 + $0x118] sm:$0xff]  }
 0x165   :  { %v708_v36 = vmul.f32 %v2192_v56, %v2192_v56  ;;  %1385 = vmatprep.mubr.bf16.mxu0 %v834_v25  ;;  %v710_v42 = vmul.f32 %v2197_v29, %v2197_v29  ;;  %v2208_v43 = vadd.f32 %v682_v31, %v176_v53  ;;  %v1826_v53 = vld [vmem:[#allocation9 + $0x188] sm:$0xff]   ;;  %v2219_v63 = vadd.f32 %v641_v32, %v2175_v54  ;;  %v1829_v54 = vld [vmem:[#allocation9 + $0x110] sm:$0xff]   ;;  %v1835_v25 = vld [vmem:[#allocation9 + $0x160] sm:$0xff]  }
 0x166   :  { %v723_v41 = vmul.f32 %v707_v28, %v2187_v20  ;;  %1426 = vmatprep.mubr.bf16.mxu1 %v836_v30  ;;  %1386 = vmatmul.mubr.bf16.vlgmr.msra.gmra.mrb[8].mxu0 %v833_v19  ;;  %v725_v44 = vmul.f32 %v709_v35, %v2189_v24  ;;  %v715_v46 = vmul.f32 %v2203_v37, %v2203_v37  ;;  %v1837_v31 = vld [vmem:[#allocation9 + $0x120] sm:$0xff]   ;;  %v1840_v35 = vld [vmem:[#allocation9 + $0x1e8] sm:$0xff]  }
 0x167   :  { %v724_v45 = vmul.f32 %v708_v36, %v2192_v56  ;;  %1427 = vmatmul.mubr.bf16.vlgmr.msra.gmra.mrb[8].mxu1 %v835_v23  ;;  %1731 = vmatpush3.bf16.msra.mxu0 %v1821_v27  ;;  %v726_v50 = vmul.f32 %v710_v42, %v2197_v29  ;;  %v717_v55 = vmul.f32 %v2208_v43, %v2208_v43  ;;  %v1836_v27 = vld [vmem:[#allocation9 + $0x1e0] sm:$0xff]   ;;  %v1841_v36 = vld [vmem:[#allocation9 + $0x128] sm:$0xff]  }
 0x168   :  { %v739_v49 = vmul.f32 0.044715, %v723_v41  ;;  %1753 = vmatpush3.bf16.msra.mxu1 %v1822_v33  ;;  %1732 = vmatprep.subr.bf16.mxu0 %v1823_v34  ;;  %v741_v59 = vmul.f32 0.044715, %v725_v44  ;;  %v731_v38 = vmul.f32 %v715_v46, %v2203_v37  ;;  %v2224_v5 = vadd.f32 %v684_v39, %v2180_v61  ;;  %v1830_v61 = vld [vmem:[#allocation9 + $0x190] sm:$0xff]   ;;  %v1838_v33 = vld [vmem:[#allocation9 + $0x1a0] sm:$0xff]  }
 0x169   :  { %v740_v60 = vmul.f32 0.044715, %v724_v45  ;;  %1754 = vmatprep.subr.bf16.mxu1 %v1824_v0  ;;  %v742_v3 = vmul.f32 0.044715, %v726_v50  ;;  %v733_v4 = vmul.f32 %v717_v55, %v2208_v43  ;;  %v716_v10 = vmul.f32 %v2219_v63, %v2219_v63  ;;  %v1839_v34 = vld [vmem:[#allocation9 + $0x168] sm:$0xff]   ;;  %v1843_v41 = vld [vmem:[#allocation9 + $0x170] sm:$0xff]  }
 0x16a   :  { %v755_v2 = vadd.f32 %v739_v49, %v2187_v20  ;;  %v757_v6 = vadd.f32 %v741_v59, %v2189_v24  ;;  %v747_v9 = vmul.f32 0.044715, %v731_v38  ;;  %v718_v40 = vmul.f32 %v2224_v5, %v2224_v5  ;;  %v1842_v0 = vld [vmem:[#allocation9 + $0x1a8] sm:$0xff]   ;;  %v1844_v44 = vld [vmem:[#allocation9 + $0x1f0] sm:$0xff]  }
 0x16b   :  { %v756_v7 = vadd.f32 %v740_v60, %v2192_v56  ;;  %1733 = vmatpush3.bf16.msra.mxu0 %v1825_v47  ;;  %v758_v12 = vadd.f32 %v742_v3, %v2197_v29  ;;  %v749_v51 = vmul.f32 0.044715, %v733_v4  ;;  %v732_v16 = vmul.f32 %v716_v10, %v2219_v63  ;;  %v1845_v47 = vld [vmem:[#allocation9 + $0x130] sm:$0xff]   ;;  %v1849_v10 = vld [vmem:[#allocation9 + $0x138] sm:$0xff]  }
 0x16c   :  { %v771_v48 = vmul.f32 0.7978846, %v755_v2  ;;  %1755 = vmatpush3.bf16.msra.mxu1 %v1826_v53  ;;  %1734 = vmatprep.subr.bf16.mxu0 %v1827_v58  ;;  %v773_v14 = vmul.f32 0.7978846, %v757_v6  ;;  %v763_v57 = vadd.f32 %v747_v9, %v2203_v37  ;;  %v734_v19 = vmul.f32 %v718_v40, %v2224_v5  ;;  %v1846_v55 = vld [vmem:[#allocation9 + $0x1b0] sm:$0xff]   ;;  %v1847_v53 = vld [vmem:[#allocation9 + $0x178] sm:$0xff]  }
 0x16d   :  { %v772_v15 = vmul.f32 0.7978846, %v756_v7  ;;  %1756 = vmatprep.subr.bf16.mxu1 %v1828_v1  ;;  %v774_v17 = vmul.f32 0.7978846, %v758_v12  ;;  %v765_v18 = vadd.f32 %v749_v51, %v2208_v43  ;;  %v748_v11 = vmul.f32 0.044715, %v732_v16 }
 0x16e   :  { %1867 = vtanh.f32 %v771_v48  ;;  %v779_v52 = vmul.f32 0.7978846, %v763_v57  ;;  %v750_v23 = vmul.f32 0.044715, %v734_v19  ;;  %v691_v60 = vmul.f32 0.5, %v2187_v20  ;;  %v1848_v1 = vld [vmem:[#allocation9 + $0x1f8] sm:$0xff]  }
 0x16f   :  { %1869 = vtanh.f32 %v773_v14  ;;  %1735 = vmatpush3.bf16.msra.mxu0 %v1829_v54  ;;  %v781_v22 = vmul.f32 0.7978846, %v765_v18  ;;  %v764_v26 = vadd.f32 %v748_v11, %v2219_v63  ;;  %v699_v38 = vmul.f32 0.5, %v2203_v37  ;;  %v1850_v37 = vld [vmem:[#allocation9 + $0x1b8] sm:$0xff]  }
 0x170   :  { %1871 = vtanh.f32 %v772_v15  ;;  %1757 = vmatpush3.bf16.msra.mxu1 %v1830_v61  ;;  %1736 = vmatprep.subr.bf16.mxu0 %v1831_v13  ;;  %v766_v28 = vadd.f32 %v750_v23, %v2224_v5  ;;  %v693_v3 = vmul.f32 0.5, %v2189_v24  ;;  %v701_v4 = vmul.f32 0.5, %v2208_v43 }
 0x171   :  { %1873 = vtanh.f32 %v774_v17  ;;  %1758 = vmatprep.subr.bf16.mxu1 %v1832_v62  ;;  %v780_v30 = vmul.f32 0.7978846, %v764_v26  ;;  %v692_v54 = vmul.f32 0.5, %v2192_v56  ;;  %v700_v40 = vmul.f32 0.5, %v2219_v63 }
 0x172   :  { %1875 = vtanh.f32 %v779_v52  ;;  %v782_v32 = vmul.f32 0.7978846, %v766_v28  ;;  %v694_v43 = vmul.f32 0.5, %v2197_v29  ;;  %v702_v14 = vmul.f32 0.5, %v2224_v5 }
 0x173   :  { %1877 = vtanh.f32 %v781_v22  ;;  %1737 = vmatpush3.bf16.msra.mxu0 %v1833_v21 }
 0x174   :  { %1759 = vmatpush3.bf16.msra.mxu1 %v1834_v8  ;;  %1738 = vmatprep.subr.bf16.mxu0 %v1835_v25  ;;  %1879 = vtanh.f32 %v780_v30 }
 0x175   :  { %1760 = vmatprep.subr.bf16.mxu1 %v1836_v27  ;;  %1881 = vtanh.f32 %v782_v32 }
 0x177   :  { %1739 = vmatpush3.bf16.msra.mxu0 %v1837_v31 }
 0x178   :  { %v1868_v39 = vpop.eup %1867  ;;  %1761 = vmatpush3.bf16.msra.mxu1 %v1838_v33  ;;  %1740 = vmatprep.subr.bf16.mxu0 %v1839_v34 }
 0x179   :  { %v1870_v42 = vpop.eup %1869  ;;  %1762 = vmatprep.subr.bf16.mxu1 %v1840_v35  ;;  %v803_v49 = vadd.f32 1.0, %v1868_v39 }
 0x17a   :  { %v1872_v45 = vpop.eup %1871  ;;  %v805_v58 = vadd.f32 1.0, %v1870_v42 }
 0x17b   :  { %v1874_v46 = vpop.eup %1873  ;;  %1741 = vmatpush3.bf16.msra.mxu0 %v1841_v36  ;;  %v804_v6 = vadd.f32 1.0, %v1872_v45  ;;  %v819_v12 = vmul.f32 %v803_v49, %v691_v60 }
 0x17c   :  { %v1876_v50 = vpop.eup %1875  ;;  %1763 = vmatpush3.bf16.msra.mxu1 %v1842_v0  ;;  %1742 = vmatprep.subr.bf16.mxu0 %v1843_v41  ;;  %v806_v48 = vadd.f32 1.0, %v1874_v46  ;;  %v821_v24 = vmul.f32 %v805_v58, %v693_v3 }
 0x17d   :  { %v1878_v59 = vpop.eup %1877  ;;  %1764 = vmatprep.subr.bf16.mxu1 %v1844_v44  ;;  %v811_v2 = vadd.f32 1.0, %v1876_v50  ;;  %v820_v56 = vmul.f32 %v804_v6, %v692_v54 }
 0x17e   :  { %v813_v7 = vadd.f32 1.0, %v1878_v59  ;;  %v1880_v9 = vpop.eup %1879  ;;  %v822_v17 = vmul.f32 %v806_v48, %v694_v43 }
 0x17f   :  { %1743 = vmatpush3.bf16.msra.mxu0 %v1845_v47  ;;  %v827_v51 = vmul.f32 %v811_v2, %v699_v38  ;;  %v1882_v20 = vpop.eup %1881  ;;  %v812_v61 = vadd.f32 1.0, %v1880_v9  ;;  %v1685_v47 = vld [vmem:[%s2266_s4] ss:$0 sm:$0xff] }
 0x180   :  { %1765 = vmatpush3.bf16.msra.mxu1 %v1846_v55  ;;  %1744 = vmatprep.subr.bf16.mxu0 %v1847_v53  ;;  %v829_v13 = vmul.f32 %v813_v7, %v701_v4  ;;  %v814_v15 = vadd.f32 1.0, %v1882_v20 }
 0x181   :  { %1766 = vmatprep.subr.bf16.mxu1 %v1848_v1  ;;  %v837_v57 = vpack.c.bf16 %v827_v51, %v819_v12  ;;  %v828_v16 = vmul.f32 %v812_v61, %v700_v40 }
 0x182   :  { %v839_v62 = vpack.c.bf16 %v829_v13, %v821_v24  ;;  %v830_v18 = vmul.f32 %v814_v15, %v702_v14 }
 0x183   :  { %1745 = vmatpush3.bf16.msra.mxu0 %v1849_v10  ;;  %v838_v19 = vpack.c.bf16 %v828_v16, %v820_v56 }
 0x184   :  { %1767 = vmatpush3.bf16.msra.mxu1 %v1850_v37  ;;  %v840_v52 = vpack.c.bf16 %v830_v18, %v822_v17 }
 0x185   :  { %1467 = vmatprep.mubr.bf16.mxu0 %v838_v19 }
 0x186   :  { %1508 = vmatprep.mubr.bf16.mxu1 %v840_v52  ;;  %1468 = vmatmul.mubr.bf16.vlgmr.msra.gmra.mrb[12].mxu0 %v837_v57 }
 0x187   :  { %1509 = vmatmul.mubr.bf16.vlgmr.msra.gmra.mrb[12].mxu1 %v839_v62 }
 0x239   :  { %v1702_v63 = vpop.f32.mrb[8].mxu0 }
 0x23a   :  { %v1724_v11 = vpop.f32.mrb[8].mxu1  ;;  %v1703_v29 = vpop.f32.mrb[9].mxu0 }
 0x23b   :  { %v1704_v21 = vadd.f32 %v1703_v29, %v1702_v63  ;;  %v1725_v5 = vpop.f32.mrb[9].mxu1  ;;  %v1705_v22 = vpop.f32.mrb[10].mxu0 }
 0x23c   :  { %v1726_v23 = vadd.f32 %v1725_v5, %v1724_v11  ;;  %v1727_v8 = vpop.f32.mrb[10].mxu1  ;;  %v1706_v25 = vpop.f32.mrb[11].mxu0 }
 0x23d   :  { %v1707_v26 = vadd.f32 %v1706_v25, %v1705_v22  ;;  %v1728_v27 = vpop.f32.mrb[11].mxu1 }
 0x23e   :  { %v1429_v28 = vadd.f32 %v1726_v23, %v1704_v21  ;;  %v1729_v30 = vadd.f32 %v1728_v27, %v1727_v8 }
 0x240   :  { %v1432_v31 = vadd.f32 %v1729_v30, %v1707_v26 }
 0x259   :  { %v1746_v32 = vpop.f32.mrb[12].mxu0 }
 0x25a   :  { %v1768_v33 = vpop.f32.mrb[12].mxu1  ;;  %v1747_v34 = vpop.f32.mrb[13].mxu0 }
 0x25b   :  { %v1748_v35 = vadd.f32 %v1747_v34, %v1746_v32  ;;  %v1769_v36 = vpop.f32.mrb[13].mxu1  ;;  %v1749_v39 = vpop.f32.mrb[14].mxu0 }
 0x25c   :  { %v1770_v0 = vadd.f32 %v1769_v36, %v1768_v33  ;;  %v1771_v41 = vpop.f32.mrb[14].mxu1  ;;  %v1750_v42 = vpop.f32.mrb[15].mxu0 }
 0x25d   :  { %v1470_v44 = vadd.f32 %v1748_v35, %v1429_v28  ;;  %v1751_v45 = vadd.f32 %v1750_v42, %v1749_v39  ;;  %v1772_v46 = vpop.f32.mrb[15].mxu1 }
 0x25e   :  { %v1773_v49 = vadd.f32 %v1772_v46, %v1771_v41 }
 0x25f   :  { %v1511_v50 = vadd.f32 %v1770_v0, %v1470_v44  ;;  %v1473_v55 = vadd.f32 %v1751_v45, %v1432_v31 }
 0x261   :  { %v1533_v53 = vadd.f32 %v1685_v47, %v1511_v50  ;;  %v1514_v58 = vadd.f32 %v1773_v49, %v1473_v55 }
 0x263   :  { %1535 = vst [vmem:[#allocation11] sm:$0xff] %v1533_v53  ;;  %v1534_v59 = vadd.f32 %v1685_v47, %v1514_v58 }
 0x265   :  { %1536 = vst [vmem:[#allocation11 + $0x8] sm:$0xff] %v1534_v59 }
 0x266   :  { %1982 = shalt.err (!%p1979_p8)
}
 0x267   :  { %s1983_s21 = scalar_lea.hbm %s2267_s5, 256 }
 0x268   :  { %p1984_p9 = scmp.ne.s32.totalorder %s2267_s5, %s1983_s21  ;;  %p1987_p10 = scmp.lt.u32.totalorder %s1983_s21, %s2267_s5 }
 0x26a   :  { %p1989_p11 = pnand %p1987_p10, %p1984_p9 }
 0x26c   :  { %1992 = shalt.err (!%p1989_p11)
}
 0x26d   :  { %s2011_s26 = smov 128   ;;  %s2012_s27 = smov 8  }
 0x26e   :  { %1548 = dma.vmem_to_hbm [thread:$0]  %s1543_s18, 256, %s2267_s5, [#allocation5], %s2011_s26, %s2011_s26, %s2012_s27  }
 0x26f   :  { %1999 = dma.done.wait [#allocation5], 256  }
 0x270   :  { %2000 = vsyncadd [#allocation5], 4294967040 }
 0x271   :  { %1552 = vsyncpa [#allocation4], 1 }
 0x272   :  { %1553 = vsyncpa [#allocation7], 1 }
 0x273   :  { %1554 = vsyncpa [#allocation10], 1 }
 0x274   :  { %1555 = vsyncpa [#allocation5], 1 }

</bundles_post_ra>
